<compile_context>
chip_gen: v7x
topology: tpu7x:2x2x1
jax: 0.10.0
libtpu: 0.0.40
codegen_flags: <defaults>
</compile_context>

<pallas_src>
import functools

import jax
import jax.numpy as jnp
from jax.experimental import pallas as pl
from jax.experimental.pallas import tpu as pltpu

NEG_SLOPE = 0.01  # PyTorch F.leaky_relu default
LANE = 128        # TPU lane width


def _leaky_relu(x):
    return jnp.where(x > 0, x, NEG_SLOPE * x)


def _round_up(x, m):
    return ((x + m - 1) // m) * m


def _pad2(x, rows, cols):
    r, c = x.shape
    return jnp.pad(x, ((0, rows - r), (0, cols - c)))


# ---------------------------------------------------------------------------
# Kernel: one packed input, 4 MXU dots, f32 accumulation / activations.
# ---------------------------------------------------------------------------
def _decoder_kernel(x_ref, wemb_ref, bemb_ref, w1_ref, b1_ref,
                    w2_ref, b2_ref, wout_ref, bout_ref, out_ref,
                    *, act_start, emb_start):
    mm_dtype = wemb_ref.dtype          # f32 or bf16 MXU operands
    f32 = jnp.float32

    x = x_ref[...].astype(f32)

    # squash_action on the action lanes only (lanes >= act_start); padded
    # lanes are zero and tanh(0)=0, so they stay zero.
    # TODO(synk): utl.squash_action depends on `args`; tanh-squash assumed here.
    lane_in = jax.lax.broadcasted_iota(jnp.int32, x.shape, 1)
    x = jnp.where(lane_in >= act_start, jnp.tanh(x), x)

    # Fused feature extractors + concat: one dot against the block matrix
    #   W_emb = [ I (latent) | Ws (state rows) | Wa (action rows) ]
    # producing [latent | state@Ws+bs | act@Wa+ba]; leaky_relu only on the
    # embed lanes (>= emb_start), latent passes through untouched.
    h = jnp.dot(x.astype(mm_dtype), wemb_ref[...],
                preferred_element_type=f32) + bemb_ref[...]
    lane_e = jax.lax.broadcasted_iota(jnp.int32, h.shape, 1)
    h = jnp.where(lane_e >= emb_start, _leaky_relu(h), h)

    # fc layer 1 (single dot on the packed 128-lane embedding)
    h = _leaky_relu(jnp.dot(h.astype(mm_dtype), w1_ref[...],
                            preferred_element_type=f32) + b1_ref[...])
    # fc layer 2
    h = _leaky_relu(jnp.dot(h.astype(mm_dtype), w2_ref[...],
                            preferred_element_type=f32) + b2_ref[...])
    # output head (lane-padded; wrapper slices back to state_dim)
    out_ref[...] = (jnp.dot(h.astype(mm_dtype), wout_ref[...],
                            preferred_element_type=f32)
                    + bout_ref[...]).astype(out_ref.dtype)


# ---------------------------------------------------------------------------
# One-time weight packing (NOT in the per-call hot path).
# ---------------------------------------------------------------------------
def prepare_params(params, latent_dim, state_dim, action_dim, *, use_bf16=False):
    """Pack/pad all weights once. Accepts PyTorch-style (out,) or (1,out) biases."""
    as_row = lambda b: jnp.reshape(jnp.asarray(b, jnp.float32), (1, -1))
    ws = jnp.asarray(params["ws"], jnp.float32); bs = as_row(params["bs"])
    wa = jnp.asarray(params["wa"], jnp.float32); ba = as_row(params["ba"])
    w1 = jnp.asarray(params["w1"], jnp.float32); b1 = as_row(params["b1"])
    w2 = jnp.asarray(params["w2"], jnp.float32); b2 = as_row(params["b2"])
    wout = jnp.asarray(params["wout"], jnp.float32); bout = as_row(params["bout"])

    state_embed, action_embed = ws.shape[1], wa.shape[1]
    l1, l2, out_dim = w1.shape[1], w2.shape[1], wout.shape[1]

    in_dim = latent_dim + state_dim + action_dim
    emb_dim = latent_dim + state_embed + action_embed
    IN_P = _round_up(in_dim, LANE)
    E1 = _round_up(emb_dim, LANE)
    L1 = _round_up(l1, LANE)
    L2 = _round_up(l2, LANE)
    OD = _round_up(out_dim, LANE)

    w_dtype = jnp.bfloat16 if use_bf16 else jnp.float32

    # block "embedding" matrix [I | Ws | Wa] on the packed input lanes
    w_emb = jnp.zeros((IN_P, E1), jnp.float32)
    w_emb = w_emb.at[:latent_dim, :latent_dim].set(
        jnp.eye(latent_dim, dtype=jnp.float32))
    s_row, a_row = latent_dim, latent_dim + state_dim
    s_col, a_col = latent_dim, latent_dim + state_embed
    w_emb = w_emb.at[s_row:s_row + state_dim, s_col:s_col + state_embed].set(ws)
    w_emb = w_emb.at[a_row:a_row + action_dim, a_col:a_col + action_embed].set(wa)
    b_emb = jnp.zeros((1, E1), jnp.float32)
    b_emb = b_emb.at[:, s_col:s_col + state_embed].set(bs)
    b_emb = b_emb.at[:, a_col:a_col + action_embed].set(ba)

    weights = dict(
        w_emb=w_emb.astype(w_dtype), b_emb=b_emb,       # biases stay f32
        w1=_pad2(w1, E1, L1).astype(w_dtype), b1=_pad2(b1, 1, L1),
        w2=_pad2(w2, L1, L2).astype(w_dtype), b2=_pad2(b2, 1, L2),
        wout=_pad2(wout, L2, OD).astype(w_dtype), bout=_pad2(bout, 1, OD),
    )
    weights = jax.tree_util.tree_map(jax.device_put, weights)
    meta = dict(latent_dim=latent_dim, state_dim=state_dim, action_dim=action_dim,
                in_dim=in_dim, IN_P=IN_P, E1=E1, L1=L1, L2=L2, OD=OD,
                out_dim=out_dim, use_bf16=use_bf16)
    return weights, meta


# ---------------------------------------------------------------------------
# Per-call forward: pack activations, run the fused kernel.
# ---------------------------------------------------------------------------
def state_transition_decoder(latent, state, actions, weights, meta, *, tb=None):
    B = latent.shape[0]
    IN_P, OD = meta["IN_P"], meta["OD"]
    in_dim, out_dim = meta["in_dim"], meta["out_dim"]

    # batch tiling: large tiles (<=2048) to amortize ~600-cycle step overhead,
    # even number of grid blocks so both v7x TensorCores get work.
    if tb is None:
        if B <= 8:
            tb = 8
        else:
            nb = max(2, pl.cdiv(B, 2048))
            nb += nb & 1                       # even block count for megacore
            tb = _round_up(pl.cdiv(B, nb), 8)
    B_pad = _round_up(B, tb)

    x_dtype = jnp.bfloat16 if meta["use_bf16"] else jnp.float32
    # single packed activation [latent | state | actions] with one pad to
    # (B_pad, IN_P); zero padding is exact (tanh(0)=0, zero weight rows).
    x = jnp.concatenate([latent, state, actions], axis=-1).astype(x_dtype)
    x = jnp.pad(x, ((0, B_pad - B), (0, IN_P - in_dim)))

    kernel = functools.partial(
        _decoder_kernel,
        act_start=meta["latent_dim"] + meta["state_dim"],
        emb_start=meta["latent_dim"])

    weight_list = [weights[k] for k in
                   ("w_emb", "b_emb", "w1", "b1", "w2", "b2", "wout", "bout")]
    # constant (0,0) index_map: weights are fetched once, reused across steps.
    full_spec = lambda w: pl.BlockSpec(w.shape, lambda i: (0, 0))

    out = pl.pallas_call(
        kernel,
        out_shape=jax.ShapeDtypeStruct((B_pad, OD), jnp.float32),
        grid=(B_pad // tb,),
        in_specs=[pl.BlockSpec((tb, IN_P), lambda i: (i, 0))]
                 + [full_spec(w) for w in weight_list],
        out_specs=pl.BlockSpec((tb, OD), lambda i: (i, 0)),
        compiler_params=pltpu.CompilerParams(
            dimension_semantics=("parallel",)),
    )(x, *weight_list)

    return out[:B, :out_dim]


# ---------------------------------------------------------------------------
# Reference + deterministic init (PyTorch Linear-style).
# ---------------------------------------------------------------------------
def init_params(key, latent_dim, state_dim, action_dim,
                state_embed_dim, action_embed_dim, layers):
    def linear(key, fan_in, fan_out):
        kw, kb = jax.random.split(key)
        bound = 1.0 / jnp.sqrt(fan_in)
        w = jax.random.uniform(kw, (fan_in, fan_out), jnp.float32, -bound, bound)
        b = jax.random.uniform(kb, (1, fan_out), jnp.float32, -bound, bound)
        return w, b

    keys = jax.random.split(key, 5)
    ws, bs = linear(keys[0], state_dim, state_embed_dim)
    wa, ba = linear(keys[1], action_dim, action_embed_dim)
    curr = latent_dim + state_embed_dim + action_embed_dim
    w1, b1 = linear(keys[2], curr, layers[0])
    w2, b2 = linear(keys[3], layers[0], layers[1])
    wout, bout = linear(keys[4], layers[1], state_dim)  # pred_type='deterministic'
    return dict(ws=ws, bs=bs, wa=wa, ba=ba, w1=w1, b1=b1,
                w2=w2, b2=b2, wout=wout, bout=bout)


def _reference(latent, state, actions, p):
    a = jnp.tanh(actions)
    ha = _leaky_relu(a @ p["wa"] + p["ba"])
    hs = _leaky_relu(state @ p["ws"] + p["bs"])
    h = jnp.concatenate([latent, hs, ha], axis=-1)
    h = _leaky_relu(h @ p["w1"] + p["b1"])
    h = _leaky_relu(h @ p["w2"] + p["b2"])
    return h @ p["wout"] + p["bout"]


if __name__ == "__main__":
    # small shapes consistent with the module; B=24 exercises batch-tail
    # padding and the 2-block (megacore-friendly) default tiling.
    B = 24
    latent_dim, state_dim, action_dim = 32, 16, 8
    state_embed_dim, action_embed_dim = 32, 16
    layers = (64, 64)

    key = jax.random.PRNGKey(0)
    kp, kl, ks, ka = jax.random.split(key, 4)
    params = init_params(kp, latent_dim, state_dim, action_dim,
                         state_embed_dim, action_embed_dim, layers)

    latent = jax.random.normal(kl, (B, latent_dim), jnp.float32)
    state = jax.random.normal(ks, (B, state_dim), jnp.float32)
    actions = jax.random.normal(ka, (B, action_dim), jnp.float32)

    ref = _reference(latent, state, actions, params)

    # f32 path (weight packing done once, outside the per-call path)
    w_f32, meta_f32 = prepare_params(params, latent_dim, state_dim, action_dim)
    out = state_transition_decoder(latent, state, actions, w_f32, meta_f32)
    out = jax.block_until_ready(out)
    assert out.shape == (B, state_dim)
    assert jnp.allclose(out, ref, atol=1e-3, rtol=1e-3)

    # bf16-MXU path: bf16 inputs/weights, f32 accumulation & activations
    # (looser tolerance is the expected precision trade, not a bug).
    w_bf16, meta_bf16 = prepare_params(params, latent_dim, state_dim, action_dim,
                                       use_bf16=True)
    out_bf16 = state_transition_decoder(latent, state, actions, w_bf16, meta_bf16)
    out_bf16 = jax.block_until_ready(out_bf16)
    assert out_bf16.shape == (B, state_dim)
    assert jnp.allclose(out_bf16, ref, atol=2e-1, rtol=1e-1)

    print("KERNEL_OK")
</pallas_src>

<mosaic_0001>
module attributes {stable_mosaic.version = 11 : i64} {
  func.func @_decoder_kernel(%arg0: i32, %arg1: memref<16x128xf32, #tpu.memory_space<vmem>>, %arg2: memref<128x128xf32, #tpu.memory_space<vmem>>, %arg3: memref<1x128xf32, #tpu.memory_space<vmem>>, %arg4: memref<128x128xf32, #tpu.memory_space<vmem>>, %arg5: memref<1x128xf32, #tpu.memory_space<vmem>>, %arg6: memref<128x128xf32, #tpu.memory_space<vmem>>, %arg7: memref<1x128xf32, #tpu.memory_space<vmem>>, %arg8: memref<128x128xf32, #tpu.memory_space<vmem>>, %arg9: memref<1x128xf32, #tpu.memory_space<vmem>>, %arg10: memref<16x128xf32, #tpu.memory_space<vmem>>) attributes {dimension_semantics = [#tpu.dimension_semantics<parallel>], iteration_bounds = array<i64: 2>, scalar_prefetch = 0 : i64, scratch_operands = 0 : i64, tpu.core_type = #tpu.core_type<tc>, window_params = [{transform_indices = @transform_0, window_bounds = array<i64: 16, 128>}, {pipeline_mode = #tpu.pipeline_mode<synchronous>, transform_indices = @transform_1, window_bounds = array<i64: 128, 128>}, {pipeline_mode = #tpu.pipeline_mode<synchronous>, transform_indices = @transform_2, window_bounds = array<i64: 1, 128>}, {pipeline_mode = #tpu.pipeline_mode<synchronous>, transform_indices = @transform_3, window_bounds = array<i64: 128, 128>}, {pipeline_mode = #tpu.pipeline_mode<synchronous>, transform_indices = @transform_4, window_bounds = array<i64: 1, 128>}, {pipeline_mode = #tpu.pipeline_mode<synchronous>, transform_indices = @transform_5, window_bounds = array<i64: 128, 128>}, {pipeline_mode = #tpu.pipeline_mode<synchronous>, transform_indices = @transform_6, window_bounds = array<i64: 1, 128>}, {pipeline_mode = #tpu.pipeline_mode<synchronous>, transform_indices = @transform_7, window_bounds = array<i64: 128, 128>}, {pipeline_mode = #tpu.pipeline_mode<synchronous>, transform_indices = @transform_8, window_bounds = array<i64: 1, 128>}, {transform_indices = @transform_9, window_bounds = array<i64: 16, 128>}]} {
    %c0 = arith.constant 0 : index
    %c0_0 = arith.constant 0 : index
    %0 = vector.load %arg1[%c0, %c0_0] : memref<16x128xf32, #tpu.memory_space<vmem>>, vector<16x128xf32>
    %1 = tpu.iota {dimensions = array<i32: 1>} : vector<16x128xi32>
    %c48_i32 = arith.constant 48 : i32
    %2 = vector.broadcast %c48_i32 : i32 to vector<16x128xi32>
    %3 = arith.cmpi sge, %1, %2 : vector<16x128xi32>
    %4 = math.tanh %0 : vector<16x128xf32>
    %5 = arith.select %3, %4, %0 : vector<16x128xi1>, vector<16x128xf32>
    %c0_1 = arith.constant 0 : index
    %c0_2 = arith.constant 0 : index
    %6 = vector.load %arg2[%c0_1, %c0_2] : memref<128x128xf32, #tpu.memory_space<vmem>>, vector<128x128xf32>
    %cst = arith.constant dense<0.000000e+00> : vector<16x128xf32>
    %7 = tpu.matmul %5, %6, %cst {dimension_numbers = #tpu.dot_dimension_numbers<[1], [0], [0], [1], [0, 0, 1, 1], [], []>} : vector<16x128xf32>, vector<128x128xf32>, vector<16x128xf32> -> vector<16x128xf32>
    %c0_3 = arith.constant 0 : index
    %c0_4 = arith.constant 0 : index
    %8 = vector.load %arg3[%c0_3, %c0_4] : memref<1x128xf32, #tpu.memory_space<vmem>>, vector<1x128xf32>
    %9 = vector.broadcast %8 : vector<1x128xf32> to vector<16x128xf32>
    %10 = arith.addf %7, %9 : vector<16x128xf32>
    %11 = tpu.iota {dimensions = array<i32: 1>} : vector<16x128xi32>
    %c32_i32 = arith.constant 32 : i32
    %12 = vector.broadcast %c32_i32 : i32 to vector<16x128xi32>
    %13 = arith.cmpi sge, %11, %12 : vector<16x128xi32>
    %cst_5 = arith.constant 0.000000e+00 : f32
    %14 = vector.broadcast %cst_5 : f32 to vector<16x128xf32>
    %15 = arith.cmpf ogt, %10, %14 : vector<16x128xf32>
    %cst_6 = arith.constant 0.00999999977 : f32
    %16 = vector.broadcast %cst_6 : f32 to vector<16x128xf32>
    %17 = arith.mulf %16, %10 : vector<16x128xf32>
    %18 = arith.select %15, %10, %17 : vector<16x128xi1>, vector<16x128xf32>
    %19 = arith.select %13, %18, %10 : vector<16x128xi1>, vector<16x128xf32>
    %c0_7 = arith.constant 0 : index
    %c0_8 = arith.constant 0 : index
    %20 = vector.load %arg4[%c0_7, %c0_8] : memref<128x128xf32, #tpu.memory_space<vmem>>, vector<128x128xf32>
    %cst_9 = arith.constant dense<0.000000e+00> : vector<16x128xf32>
    %21 = tpu.matmul %19, %20, %cst_9 {dimension_numbers = #tpu.dot_dimension_numbers<[1], [0], [0], [1], [0, 0, 1, 1], [], []>} : vector<16x128xf32>, vector<128x128xf32>, vector<16x128xf32> -> vector<16x128xf32>
    %c0_10 = arith.constant 0 : index
    %c0_11 = arith.constant 0 : index
    %22 = vector.load %arg5[%c0_10, %c0_11] : memref<1x128xf32, #tpu.memory_space<vmem>>, vector<1x128xf32>
    %23 = vector.broadcast %22 : vector<1x128xf32> to vector<16x128xf32>
    %24 = arith.addf %21, %23 : vector<16x128xf32>
    %cst_12 = arith.constant 0.000000e+00 : f32
    %25 = vector.broadcast %cst_12 : f32 to vector<16x128xf32>
    %26 = arith.cmpf ogt, %24, %25 : vector<16x128xf32>
    %cst_13 = arith.constant 0.00999999977 : f32
    %27 = vector.broadcast %cst_13 : f32 to vector<16x128xf32>
    %28 = arith.mulf %27, %24 : vector<16x128xf32>
    %29 = arith.select %26, %24, %28 : vector<16x128xi1>, vector<16x128xf32>
    %c0_14 = arith.constant 0 : index
    %c0_15 = arith.constant 0 : index
    %30 = vector.load %arg6[%c0_14, %c0_15] : memref<128x128xf32, #tpu.memory_space<vmem>>, vector<128x128xf32>
    %cst_16 = arith.constant dense<0.000000e+00> : vector<16x128xf32>
    %31 = tpu.matmul %29, %30, %cst_16 {dimension_numbers = #tpu.dot_dimension_numbers<[1], [0], [0], [1], [0, 0, 1, 1], [], []>} : vector<16x128xf32>, vector<128x128xf32>, vector<16x128xf32> -> vector<16x128xf32>
    %c0_17 = arith.constant 0 : index
    %c0_18 = arith.constant 0 : index
    %32 = vector.load %arg7[%c0_17, %c0_18] : memref<1x128xf32, #tpu.memory_space<vmem>>, vector<1x128xf32>
    %33 = vector.broadcast %32 : vector<1x128xf32> to vector<16x128xf32>
    %34 = arith.addf %31, %33 : vector<16x128xf32>
    %cst_19 = arith.constant 0.000000e+00 : f32
    %35 = vector.broadcast %cst_19 : f32 to vector<16x128xf32>
    %36 = arith.cmpf ogt, %34, %35 : vector<16x128xf32>
    %cst_20 = arith.constant 0.00999999977 : f32
    %37 = vector.broadcast %cst_20 : f32 to vector<16x128xf32>
    %38 = arith.mulf %37, %34 : vector<16x128xf32>
    %39 = arith.select %36, %34, %38 : vector<16x128xi1>, vector<16x128xf32>
    %c0_21 = arith.constant 0 : index
    %c0_22 = arith.constant 0 : index
    %40 = vector.load %arg8[%c0_21, %c0_22] : memref<128x128xf32, #tpu.memory_space<vmem>>, vector<128x128xf32>
    %cst_23 = arith.constant dense<0.000000e+00> : vector<16x128xf32>
    %41 = tpu.matmul %39, %40, %cst_23 {dimension_numbers = #tpu.dot_dimension_numbers<[1], [0], [0], [1], [0, 0, 1, 1], [], []>} : vector<16x128xf32>, vector<128x128xf32>, vector<16x128xf32> -> vector<16x128xf32>
    %c0_24 = arith.constant 0 : index
    %c0_25 = arith.constant 0 : index
    %42 = vector.load %arg9[%c0_24, %c0_25] : memref<1x128xf32, #tpu.memory_space<vmem>>, vector<1x128xf32>
    %43 = vector.broadcast %42 : vector<1x128xf32> to vector<16x128xf32>
    %44 = arith.addf %41, %43 : vector<16x128xf32>
    %c0_26 = arith.constant 0 : index
    %c0_27 = arith.constant 0 : index
    %45 = vector.load %arg10[%c0_26, %c0_27] : memref<16x128xf32, #tpu.memory_space<vmem>>, vector<16x128xf32>
    tpu.vector_store %arg10[%c0_26, %c0_27], %44 {strides = array<i32>} : memref<16x128xf32, #tpu.memory_space<vmem>>, vector<16x128xf32>,
    return
  }
  func.func @transform_0(%arg0: i32) -> (i32, i32) {
    %c0_i32 = arith.constant 0 : i32
    %c0_i32_0 = arith.constant 0 : i32
    return %arg0, %c0_i32 : i32, i32
  }
  func.func @transform_1(%arg0: i32) -> (i32, i32) {
    %c0_i32 = arith.constant 0 : i32
    %c0_i32_0 = arith.constant 0 : i32
    %c0_i32_1 = arith.constant 0 : i32
    return %c0_i32, %c0_i32_0 : i32, i32
  }
  func.func @transform_2(%arg0: i32) -> (i32, i32) {
    %c0_i32 = arith.constant 0 : i32
    %c0_i32_0 = arith.constant 0 : i32
    %c0_i32_1 = arith.constant 0 : i32
    return %c0_i32, %c0_i32_0 : i32, i32
  }
  func.func @transform_3(%arg0: i32) -> (i32, i32) {
    %c0_i32 = arith.constant 0 : i32
    %c0_i32_0 = arith.constant 0 : i32
    %c0_i32_1 = arith.constant 0 : i32
    return %c0_i32, %c0_i32_0 : i32, i32
  }
  func.func @transform_4(%arg0: i32) -> (i32, i32) {
    %c0_i32 = arith.constant 0 : i32
    %c0_i32_0 = arith.constant 0 : i32
    %c0_i32_1 = arith.constant 0 : i32
    return %c0_i32, %c0_i32_0 : i32, i32
  }
  func.func @transform_5(%arg0: i32) -> (i32, i32) {
    %c0_i32 = arith.constant 0 : i32
    %c0_i32_0 = arith.constant 0 : i32
    %c0_i32_1 = arith.constant 0 : i32
    return %c0_i32, %c0_i32_0 : i32, i32
  }
  func.func @transform_6(%arg0: i32) -> (i32, i32) {
    %c0_i32 = arith.constant 0 : i32
    %c0_i32_0 = arith.constant 0 : i32
    %c0_i32_1 = arith.constant 0 : i32
    return %c0_i32, %c0_i32_0 : i32, i32
  }
  func.func @transform_7(%arg0: i32) -> (i32, i32) {
    %c0_i32 = arith.constant 0 : i32
    %c0_i32_0 = arith.constant 0 : i32
    %c0_i32_1 = arith.constant 0 : i32
    return %c0_i32, %c0_i32_0 : i32, i32
  }
  func.func @transform_8(%arg0: i32) -> (i32, i32) {
    %c0_i32 = arith.constant 0 : i32
    %c0_i32_0 = arith.constant 0 : i32
    %c0_i32_1 = arith.constant 0 : i32
    return %c0_i32, %c0_i32_0 : i32, i32
  }
  func.func @transform_9(%arg0: i32) -> (i32, i32) {
    %c0_i32 = arith.constant 0 : i32
    %c0_i32_0 = arith.constant 0 : i32
    return %arg0, %c0_i32 : i32, i32
  }
}

</mosaic_0001>

<bundles_post_ra>
// kernel: tpu_custom_call.1
= control target key start
LH: loop header
LB: loop body
LE: loop exit
PB: predicated region body
PF: predicated region fallthrough
CT: control target
= control target key end

     0   :  { %s2021_s0 = inlined_call_operand.hbm [shape: f32[32,128], index: 0, kind: input, shape index: {}]   ;;  %s2022_s1 = inlined_call_operand.hbm [shape: f32[128,128], index: 1, kind: input, shape index: {}]   ;;  %s2023_s2 = inlined_call_operand.vmem [shape: f32[1,128], index: 2, kind: input, shape index: {}]   ;;  %s2024_s3 = inlined_call_operand.hbm [shape: f32[128,128], index: 3, kind: input, shape index: {}]   ;;  %s2025_s4 = inlined_call_operand.vmem [shape: f32[1,128], index: 4, kind: input, shape index: {}]   ;;  %s2026_s5 = inlined_call_operand.hbm [shape: f32[128,128], index: 5, kind: input, shape index: {}]   ;;  %s2027_s6 = inlined_call_operand.vmem [shape: f32[1,128], index: 6, kind: input, shape index: {}]   ;;  %s2028_s7 = inlined_call_operand.hbm [shape: f32[128,128], index: 7, kind: input, shape index: {}]   ;;  %s2029_s8 = inlined_call_operand.vmem [shape: f32[1,128], index: 8, kind: input, shape index: {}]   ;;  %s2030_s9 = inlined_call_operand.hbm [shape: f32[32,128], index: 9, kind: output, shape index: {}]  }
   0x1   :  { %2037 = sst [smem:[#allocation18_spill]] %s2030_s9 }
   0x2   :  { %14 = vsyncpa [#allocation3], 0 }
   0x3   :  { %16 = vsyncpa [#allocation3 + $0x1], 0 }
   0x4   :  { %17 = vsyncpa [#allocation6], 0 }
   0x5   :  { %18 = vsyncpa [#allocation9], 0 }
   0x6   :  { %19 = vsyncpa [#allocation4], 0 }
   0x7   :  { %21 = vsyncpa [#allocation4 + $0x1], 0  ;;  %s1701_s30 = smov 0   ;;  %s1703_s10 = smov 0  }
   0x8   :  { %s1705_s11 = smov 0   ;;  %s1707_s12 = smov 0  }
   0x9 LB: > { %2038 = sst [smem:[#allocation16_spill]] %s1627_s30  ;;  %s1722_s13 = sadd.s32 4294967295, %s1639_s12   ;;  %s1639_s12 = sphi %s1707_s12, %s2062_s12   ;;  %s1635_s11 = sphi %s1705_s11, %s2061_s11   ;;  %s1631_s10 = sphi %s1703_s10, %s2060_s10   ;;  %s1627_s30 = sphi %s1701_s30, %s2059_s30  }
   0xa   : > { %s960_s14 = sadd.s32 4294967294, %s1639_s12   ;;  %p47_p0 = scmp.ne.s32.totalorder %s1631_s10, %s1627_s30 }
   0xb   : > { %p2031_p1 = scmp.eq.s32.totalorder %s1722_s13, 0  ;;  %p245_p3 = scmp.eq.s32.totalorder %s960_s14, 1 }
   0xc   : > { %p961_p5 = scmp.ge.s32.totalorder %s1639_s12, 1  ;;  %p252_p7 = scmp.lt.s32.totalorder %s1639_s12, 3 }
   0xd   : > { %p1731_p4 = por %p2031_p1, %p47_p0  ;;  %p1736_p6 = por %p245_p3, %p47_p0 }
   0xe   : > { %p1741_p8 = pnand %p961_p5, %p252_p7  ;;  %s1641_s18 = smov [#allocation5]  }
   0xf   : > { %s2039_s15 = scalar_select %p1731_p4, 1, 0 }
  0x10   : > { %s2040_s16 = scalar_select %p1736_p6, 1, 0 }
  0x11   : > { %s2042_s17 = scalar_select %p1741_p8, 1, 0 }
  0x12   : > { %2041 = sst [smem:[#allocation17_spill]] %s2040_s16  ;;  %s264_s19 = sshll.u32 %s1641_s18, 4  ;;  %s1745_s19 = int_to_ptr.vmem [resolvable:$true] %s264_s19 }
  0x13   : > { %p1348_p9 = pneg %p1741_p8  ;;  %s1642_s21 = smov [#allocation8]  }
  0x14   : > { %s296_s22 = sshll.u32 %s1642_s21, 4  ;;  %s1643_s23 = smov [#allocation7]   ;;  %s1756_s22 = int_to_ptr.vmem [resolvable:$true] %s296_s22 }
  0x15   : > { %p1752_p11 = pnand %p1348_p9, %p2031_p1  ;;  %s1758_s24 = sshll.u32 %s1643_s23, 4  ;;  %s281_s24 = int_to_ptr.vmem [resolvable:$true] %s1758_s24 }
  0x16   : > { %s1423_s27 = scalar_lea.hbm %s2022_s1, 2048 }
  0x17   : > { %p1424_p12 = scmp.ne.s32.totalorder %s2022_s1, %s1423_s27  ;;  %p1768_p13 = pneg %p1752_p11 }
  0x18   : > { %p1430_p5 = scmp.lt.u32.totalorder %s1423_s27, %s2022_s1 }
  0x19   : > { %p1426_p0 = pnand %p1768_p13, %p1424_p12 }
  0x1b   : > { %p1427_p3 = pneg %p1426_p0 }
  0x1d   : > { %p1432_p7 = pnand %p1430_p5, %p1427_p3 }
  0x1f   : > { %1435 = shalt.err (!%p1432_p7)
}
  0x20   : > { %s1436_s23 = scalar_lea.vmem %s1745_s19, 2048  ;;  %p1444_p2 = scmp.lt.s32.totalorder %s1745_s19, %s1745_s19 }
  0x21   : > { %p1437_p9 = scmp.ne.s32.totalorder %s1745_s19, %s1436_s23  ;;  %p1445_p6 = scmp.lt.s32.totalorder %s1436_s23, %s1436_s23 }
  0x23   : > { %p1439_p10 = pnand %p1437_p9, %p1768_p13  ;;  %p1446_p12 = por %p1445_p6, %p1444_p2 }
  0x25   : > { %p1440_p1 = pneg %p1439_p10 }
  0x27   : > { %p1447_p0 = pnand %p1446_p12, %p1440_p1 }
  0x29   : > { %1450 = shalt.err (!%p1447_p0)
}
  0x2a   : > { %s1644_s25 = smov 128   ;;  %s1645_s26 = smov 8  }
  0x2b   : > { %1351 = dma.hbm_to_vmem [thread:$0]  (!%p1752_p11), %s2022_s1, 2048, %s1745_s19, [#allocation6], %s1644_s25, %s1644_s25, %s1645_s26  }
  0x2c   : > { %s1451_s21 = scalar_lea.hbm %s2026_s5, 2048 }
  0x2d   : > { %p1452_p1 = scmp.ne.s32.totalorder %s2026_s5, %s1451_s21  ;;  %p1458_p10 = scmp.lt.u32.totalorder %s1451_s21, %s2026_s5 }
  0x2f   : > { %p1454_p2 = pnand %p1452_p1, %p1768_p13 }
  0x31   : > { %p1455_p6 = pneg %p1454_p2 }
  0x33   : > { %p1460_p3 = pnand %p1458_p10, %p1455_p6 }
  0x35   : > { %1463 = shalt.err (!%p1460_p3)
}
  0x36   : > { %s1464_s19 = scalar_lea.vmem %s1756_s22, 2048  ;;  %p1472_p12 = scmp.lt.s32.totalorder %s1756_s22, %s1756_s22 }
  0x37   : > { %p1465_p5 = scmp.ne.s32.totalorder %s1756_s22, %s1464_s19  ;;  %p1473_p0 = scmp.lt.s32.totalorder %s1464_s19, %s1464_s19 }
  0x39   : > { %p1467_p7 = pnand %p1465_p5, %p1768_p13  ;;  %p1474_p1 = por %p1473_p0, %p1472_p12 }
  0x3b   : > { %p1468_p9 = pneg %p1467_p7 }
  0x3d   : > { %p1475_p2 = pnand %p1474_p1, %p1468_p9 }
  0x3f   : > { %1478 = shalt.err (!%p1475_p2)
}
  0x40   : > { %1357 = dma.hbm_to_vmem [thread:$0]  (!%p1752_p11), %s2026_s5, 2048, %s1756_s22, [#allocation9], %s1644_s25, %s1644_s25, %s1645_s26  }
  0x41   : > { %s1479_s28 = scalar_lea.hbm %s2024_s3, 2048 }
  0x42   : > { %p1480_p6 = scmp.ne.s32.totalorder %s2024_s3, %s1479_s28  ;;  %p1486_p5 = scmp.lt.u32.totalorder %s1479_s28, %s2024_s3 }
  0x44   : > { %p1482_p10 = pnand %p1480_p6, %p1768_p13 }
  0x46   : > { %p1483_p3 = pneg %p1482_p10 }
  0x48   : > { %p1488_p7 = pnand %p1486_p5, %p1483_p3 }
  0x4a   : > { %1491 = shalt.err (!%p1488_p7)
}
  0x4b   : > { %s1492_s19 = scalar_lea.vmem %s281_s24, 2048  ;;  %p1500_p1 = scmp.lt.s32.totalorder %s281_s24, %s281_s24 }
  0x4c   : > { %p1493_p9 = scmp.ne.s32.totalorder %s281_s24, %s1492_s19  ;;  %p1501_p2 = scmp.lt.s32.totalorder %s1492_s19, %s1492_s19 }
  0x4e   : > { %p1495_p12 = pnand %p1493_p9, %p1768_p13  ;;  %p1502_p4 = por %p1501_p2, %p1500_p1 }
  0x50   : > { %p1496_p0 = pneg %p1495_p12 }
  0x52   : > { %p1503_p8 = pnand %p1502_p4, %p1496_p0 }
  0x54   : > { %1506 = shalt.err (!%p1503_p8)
}
  0x55   : > { %1354 = dma.hbm_to_vmem [thread:$0]  (!%p1752_p11), %s2024_s3, 2048, %s281_s24, [#allocation6], %s1644_s25, %s1644_s25, %s1645_s26  }
  0x56   : > { %s1646_s30 = smov [#allocation10]   ;;  %s1507_s29 = scalar_lea.hbm %s2028_s7, 2048 }
  0x57   : > { %s312_s16 = sshll.u32 %s1646_s30, 4  ;;  %p1508_p4 = scmp.ne.s32.totalorder %s2028_s7, %s1507_s29  ;;  %s313_s16 = int_to_ptr.vmem [resolvable:$true] %s312_s16 }
  0x58   : > { %p1514_p10 = scmp.lt.u32.totalorder %s1507_s29, %s2028_s7 }
  0x59   : > { %p1510_p8 = pnand %p1508_p4, %p1768_p13 }
  0x5b   : > { %p1511_p6 = pneg %p1510_p8 }
  0x5d   : > { %p1516_p3 = pnand %p1514_p10, %p1511_p6 }
  0x5f   : > { %1519 = shalt.err (!%p1516_p3)
}
  0x60   : > { %s1520_s24 = scalar_lea.vmem %s313_s16, 2048  ;;  %p1528_p12 = scmp.lt.s32.totalorder %s313_s16, %s313_s16 }
  0x61   : > { %p1521_p5 = scmp.ne.s32.totalorder %s313_s16, %s1520_s24  ;;  %p1529_p0 = scmp.lt.s32.totalorder %s1520_s24, %s1520_s24 }
  0x63   : > { %p1523_p7 = pnand %p1521_p5, %p1768_p13  ;;  %p1530_p1 = por %p1529_p0, %p1528_p12 }
  0x65   : > { %p1524_p9 = pneg %p1523_p7 }
  0x67   : > { %p1531_p2 = pnand %p1530_p1, %p1524_p9 }
  0x69   : > { %1534 = shalt.err (!%p1531_p2)
}
  0x6a   : > { %1360 = dma.hbm_to_vmem [thread:$0]  (!%p1752_p11), %s2028_s7, 2048, %s313_s16, [#allocation9], %s1644_s25, %s1644_s25, %s1645_s26  }
  0x6b   : > { %s1862_s14 = sadd.s32 1, %s1639_s12   ;;  %s34_s20 = sadd.s32 1, %s1635_s11 }
  0x6c   : > { %s31_s30 = ssub.s32 %s1639_s12, %s1862_s14  ;;  %p41_p13 = scmp.ne.s32.totalorder %s1635_s11, %s1631_s10 }
  0x6d   : > { %p32_p4 = scmp.eq.s32.totalorder %s31_s30, 0  ;;  %p42_p8 = scmp.eq.s32.totalorder %s1639_s12, 0 }
  0x6e   : > { %p2045_p6 = scmp.eq.s32.totalorder %s1722_s13, 1  ;;  %p1373_p3 = scmp.lt.s32.totalorder %s1639_s12, 2 }
  0x6f   : > { %s1878_s28 = scalar_select %p32_p4, %s1635_s11, %s34_s20  }
  0x70   : > { %p1872_p10 = por %p2045_p6, %p41_p13  ;;  %p43_p5 = por %p42_p8, %p41_p13 }
  0x71   : > { %s329_s29 = sand.u32 1, %s1635_s11   ;;  %s986_s16 = sshll.u32 %s1639_s12, 8 }
  0x72   : > { %s967_s18 = sshll.u32 %s329_s29, 4  ;;  %s1885_s19 = scalar_lea.hbm %s2021_s0, %s986_s16 }
  0x73   : > { %s333_s24 = scalar_lea.vmem [#allocation2], %s967_s18  ;;  %p1889_p11 = pnand %p1373_p3, %p43_p5 }
  0x74   : > { %s340_s22 = sshll.u32 %s333_s24, 4  ;;  %s1893_s20 = scalar_lea.sflag [#allocation3], %s329_s29  ;;  %s1887_s22 = int_to_ptr.vmem [resolvable:$true] %s340_s22 }
  0x75   : > { %s1535_s30 = scalar_lea.hbm %s1885_s19, 256  ;;  %p1537_p9 = pneg %p1889_p11 }
  0x76   : > { %p1536_p7 = scmp.ne.s32.totalorder %s1885_s19, %s1535_s30  ;;  %s1540_s21 = scalar_lea.hbm %s2021_s0, 512 }
  0x77   : > { %p1541_p1 = scmp.lt.u32.totalorder %s1885_s19, %s2021_s0  ;;  %p1542_p2 = scmp.lt.u32.totalorder %s1540_s21, %s1535_s30 }
  0x78   : > { %p1538_p12 = pnand %p1537_p9, %p1536_p7  ;;  %p1544_p4 = scmp.lt.u32.totalorder %s1535_s30, %s1885_s19 }
  0x79   : > { %p1543_p13 = por %p1542_p2, %p1541_p1 }
  0x7a   : > { %p1539_p0 = pneg %p1538_p12 }
  0x7b   : > { %p1545_p8 = por %p1544_p4, %p1543_p13 }
  0x7d   : > { %p1546_p6 = pnand %p1545_p8, %p1539_p0 }
  0x7f   : > { %1549 = shalt.err (!%p1546_p6)
}
  0x80   : > { %s1550_s29 = scalar_lea.vmem %s1887_s22, 256  ;;  %s1647_s18 = smov [#allocation2]  }
  0x81   : > { %p1551_p3 = scmp.ne.s32.totalorder %s1887_s22, %s1550_s29  ;;  %s1555_s16 = sshll.u32 %s1647_s18, 4  ;;  %s1556_s16 = int_to_ptr.vmem [resolvable:$false] %s1555_s16 }
  0x82   : > { %s1557_s23 = scalar_lea.vmem %s1556_s16, 512  ;;  %p1558_p12 = scmp.lt.s32.totalorder %s1887_s22, %s1556_s16 }
  0x83   : > { %p1553_p5 = pnand %p1551_p3, %p1537_p9  ;;  %p1559_p1 = scmp.lt.s32.totalorder %s1557_s23, %s1550_s29 }
  0x85   : > { %p1554_p7 = pneg %p1553_p5  ;;  %p1560_p2 = por %p1559_p1, %p1558_p12 }
  0x87   : > { %p1561_p13 = pnand %p1560_p2, %p1554_p7 }
  0x89   : > { %1564 = shalt.err (!%p1561_p13)
}
  0x8a   : > { %1364 = dma.hbm_to_vmem [thread:$0]  (!%p1889_p11), %s1885_s19, 256, %s1887_s22, %s1893_s20, %s1644_s25, %s1644_s25, %s1645_s26  }
  0x8b   : > { %p2048_p9 = scmp.ne.s32.totalorder %s2042_s17, 0 }
  0x8c   : > { %s1927_s30 = sand.u32 (!%p2048_p9), 1, %s1631_s10   ;;  %p2049_p0 = scmp.ne.s32.totalorder (!%p2048_p9), %s2039_s15, 0 }
  0x8d   : > { %352 = sbr.rel (%p2048_p9) target bundleno = 1079 (0x437), region = 56  ;;  %s971_s21 = sshll.u32 (!%p2048_p9), %s1927_s30, 4 }
  0x8e   : > { %s355_s24 = scalar_lea.sflag (!%p2048_p9), [#allocation3], %s1927_s30  ;;  %s1933_s9 = scalar_lea.vmem (!%p2048_p9), [#allocation2], %s971_s21 }
  0x94   : > { %1610 = dma.done.wait (%p2049_p0), %s355_s24, 256  }
  0x95   : > { %1612 = vsyncadd (%p2049_p0), %s355_s24, 4294967040  ;;  %p2050_p11 = scmp.eq.s32.totalorder %s1722_s13, 0 }
  0x97   : > { %1614 = dma.done.wait (%p2050_p11), [#allocation6], 4096   ;;  %p2051_p4 = pmov %p2050_p11 }
  0x99   : > { %1616 = vsyncadd (%p2051_p4), [#allocation6], 4294963200  ;;  %p2052_p8 = pmov %p2051_p4 }
  0x9a   : > { %p2053_p6 = pmov %p2051_p4 }
  0x9b   : > { %1618 = dma.done.wait (%p2052_p8), [#allocation9], 4096  }
  0x9c   : > { %1620 = vsyncadd (%p2053_p6), [#allocation9], 4294963200  ;;  %v420_v0 = vld [vmem:[#allocation5] sm:$0xff]  ;;  %v421_v1 = vld [vmem:[#allocation5 + $0x8] sm:$0xff]  ;;  %v413_v12 = vlaneseq  ;;  %s408_s20 = scalar_lea.vmem [#allocation11], %s971_s21  ;;  %s987_s23 = sshll.u32 %s1722_s13, 8 }
  0x9d   : > { %v422_v2 = vld [vmem:[#allocation5 + $0x10] sm:$0xff]  ;;  %v1200_v3 = vpack.c.bf16 %v421_v1, %v420_v0  ;;  %v423_v4 = vld [vmem:[#allocation5 + $0x18] sm:$0xff]  ;;  %v424_v6 = vld [vmem:[#allocation5 + $0x20] sm:$0xff]  ;;  %s849_s29 = sshll.u32 %s408_s20, 4  ;;  %s2054_s15 = sld [smem:[#allocation18_spill]]  ;;  %s1972_s29 = int_to_ptr.vmem [resolvable:$true] %s849_s29 }
  0x9e   : > { %v1204_v5 = vpack.c.bf16 %v423_v4, %v422_v2  ;;  %v425_v7 = vld [vmem:[#allocation5 + $0x28] sm:$0xff]  ;;  %v426_v9 = vld [vmem:[#allocation5 + $0x30] sm:$0xff]  ;;  %v427_v10 = vld [vmem:[#allocation5 + $0x38] sm:$0xff]  ;;  %v1948_v24 = vand.u32 127, %v413_v12  ;;  %s836_s21 = scalar_lea.sflag [#allocation4], %s1927_s30  ;;  %s1565_s25 = scalar_lea.vmem %s1972_s29, 256 }
  0x9f   : > { %1201 = vmatprep.subr.bf16.mxu0 %v1200_v3  ;;  %v1208_v8 = vpack.c.bf16 %v425_v7, %v424_v6  ;;  %v411_v11 = vld [vmem:[%s1933_s9] sm:$0xff]  ;;  %v528_v14 = vld [vmem:[#allocation7 + $0x8] sm:$0xff]  ;;  %v530_v17 = vld [vmem:[#allocation7 + $0x18] sm:$0xff]  ;;  %v1212_v21 = vpack.c.bf16 %v427_v10, %v426_v9  ;;  %p1566_p3 = scmp.ne.s32.totalorder %s1972_s29, %s1565_s25  ;;  %s1648_s13 = smov [#allocation11]  }
  0xa0   : > { %1203 = vmatpush3.bf16.msra.mxu0 %v1200_v3  ;;  %1419 = vtanh.f32 %v411_v11  ;;  %v527_v13 = vld [vmem:[#allocation7] sm:$0xff]  ;;  %v529_v15 = vld [vmem:[#allocation7 + $0x10] sm:$0xff]  ;;  %v532_v20 = vld [vmem:[#allocation7 + $0x28] sm:$0xff]  ;;  %vm415_vm0 = vcmp.ge.s32.totalorder %v1948_v24, 48  ;;  %vm518_vm2 = vcmp.ge.s32.totalorder %v1948_v24, 32  ;;  %s1569_s26 = sshll.u32 %s1648_s13, 4  ;;  %s1570_s26 = int_to_ptr.vmem [resolvable:$false] %s1569_s26 }
  0xa1   : > { %1205 = vmatprep.subr.bf16.mxu0 %v1204_v5  ;;  %v1232_v16 = vpack.c.bf16 %v528_v14, %v527_v13  ;;  %v1236_v18 = vpack.c.bf16 %v530_v17, %v529_v15  ;;  %v531_v19 = vld [vmem:[#allocation7 + $0x20] sm:$0xff]  ;;  %v429_v23 = vld [vmem:[#allocation5 + $0x48] sm:$0xff]  ;;  %v533_v26 = vld [vmem:[#allocation7 + $0x30] sm:$0xff]  ;;  %p1567_p5 = pnand %p1566_p3, %p1872_p10  ;;  %s1571_s19 = scalar_lea.vmem %s1570_s26, 512 }
  0xa2   : > { %v428_v22 = vld [vmem:[#allocation5 + $0x40] sm:$0xff]  ;;  %v1240_v25 = vpack.c.bf16 %v532_v20, %v531_v19  ;;  %v534_v27 = vld [vmem:[#allocation7 + $0x38] sm:$0xff]  ;;  %v430_v29 = vld [vmem:[#allocation5 + $0x50] sm:$0xff]  ;;  %p1572_p12 = scmp.lt.s32.totalorder %s1972_s29, %s1570_s26  ;;  %p1573_p1 = scmp.lt.s32.totalorder %s1571_s19, %s1565_s25 }
  0xa3   : > { %1233 = vmatprep.subr.bf16.mxu1 %v1232_v16  ;;  %v1216_v28 = vpack.c.bf16 %v429_v23, %v428_v22  ;;  %v431_v30 = vld [vmem:[#allocation5 + $0x58] sm:$0xff]  ;;  %v1244_v31 = vpack.c.bf16 %v534_v27, %v533_v26  ;;  %v535_v34 = vld [vmem:[#allocation7 + $0x40] sm:$0xff]  ;;  %v536_v35 = vld [vmem:[#allocation7 + $0x48] sm:$0xff]  ;;  %s1977_s17 = scalar_lea.hbm %s2054_s15, %s987_s23  ;;  %p1568_p7 = pneg %p1567_p5 }
  0xa4   : > { %1207 = vmatpush3.bf16.msra.mxu0 %v1204_v5  ;;  %1235 = vmatpush3.bf16.msra.mxu1 %v1232_v16  ;;  %v412_v33 = vld [vmem:[%s1933_s9 + $0x8] sm:$0xff]  ;;  %v1220_v36 = vpack.c.bf16 %v431_v30, %v430_v29  ;;  %v432_v38 = vld [vmem:[#allocation5 + $0x60] sm:$0xff]  ;;  %v1248_v40 = vpack.c.bf16 %v536_v35, %v535_v34  ;;  %v537_v41 = vld [vmem:[#allocation7 + $0x50] sm:$0xff]  ;;  %p1574_p2 = por %p1573_p1, %p1572_p12 }
  0xa5   : > { %1209 = vmatprep.subr.bf16.mxu0 %v1208_v8  ;;  %1237 = vmatprep.subr.bf16.mxu1 %v1236_v18  ;;  %v433_v39 = vld [vmem:[#allocation5 + $0x68] sm:$0xff]  ;;  %1421 = vtanh.f32 %v412_v33  ;;  %v538_v42 = vld [vmem:[#allocation7 + $0x58] sm:$0xff]  ;;  %v434_v44 = vld [vmem:[#allocation5 + $0x70] sm:$0xff] }
  0xa6   : > { %v1224_v43 = vpack.c.bf16 %v433_v39, %v432_v38  ;;  %v435_v45 = vld [vmem:[#allocation5 + $0x78] sm:$0xff]  ;;  %v1252_v46 = vpack.c.bf16 %v538_v42, %v537_v41  ;;  %v539_v50 = vld [vmem:[#allocation7 + $0x60] sm:$0xff]  ;;  %v540_v51 = vld [vmem:[#allocation7 + $0x68] sm:$0xff]  ;;  %p1575_p13 = pnand %p1574_p2, %p1568_p7 }
  0xa7   : > { %v1228_v47 = vpack.c.bf16 %v435_v45, %v434_v44  ;;  %v1256_v52 = vpack.c.bf16 %v540_v51, %v539_v50  ;;  %v541_v53 = vld [vmem:[#allocation7 + $0x70] sm:$0xff]  ;;  %v542_v54 = vld [vmem:[#allocation7 + $0x78] sm:$0xff]  ;;  %v631_v56 = vld [vmem:[#allocation8] sm:$0xff] }
  0xa8   : > { %1211 = vmatpush3.bf16.msra.mxu0 %v1208_v8  ;;  %1239 = vmatpush3.bf16.msra.mxu1 %v1236_v18  ;;  %v1260_v55 = vpack.c.bf16 %v542_v54, %v541_v53  ;;  %v632_v57 = vld [vmem:[#allocation8 + $0x8] sm:$0xff]  ;;  %v633_v58 = vld [vmem:[#allocation8 + $0x10] sm:$0xff]  ;;  %v634_v60 = vld [vmem:[#allocation8 + $0x18] sm:$0xff] }
  0xa9   : > { %1213 = vmatprep.subr.bf16.mxu0 %v1212_v21  ;;  %1241 = vmatprep.subr.bf16.mxu1 %v1240_v25  ;;  %v1264_v59 = vpack.c.bf16 %v632_v57, %v631_v56  ;;  %v1268_v61 = vpack.c.bf16 %v634_v60, %v633_v58  ;;  %v635_v62 = vld [vmem:[#allocation8 + $0x20] sm:$0xff]  ;;  %v636_v63 = vld [vmem:[#allocation8 + $0x28] sm:$0xff]  ;;  %v637_v1 = vld [vmem:[#allocation8 + $0x30] sm:$0xff] }
  0xaa   : > { %v1420_v32 = vpop.eup %1419  ;;  %v1272_v0 = vpack.c.bf16 %v636_v63, %v635_v62  ;;  %v638_v2 = vld [vmem:[#allocation8 + $0x38] sm:$0xff]  ;;  %v639_v4 = vld [vmem:[#allocation8 + $0x40] sm:$0xff]  ;;  %v640_v5 = vld [vmem:[#allocation8 + $0x48] sm:$0xff] }
  0xab   : > { %v418_v37 = vsel %vm415_vm0, %v1420_v32, %v411_v11  ;;  %v1276_v3 = vpack.c.bf16 %v638_v2, %v637_v1  ;;  %v1280_v6 = vpack.c.bf16 %v640_v5, %v639_v4  ;;  %v641_v7 = vld [vmem:[#allocation8 + $0x50] sm:$0xff]  ;;  %v642_v8 = vld [vmem:[#allocation8 + $0x58] sm:$0xff]  ;;  %v977_v10 = vld [vmem:[%s2023_s2] ss:$0 sm:$0xff] }
  0xac   : > { %1215 = vmatpush3.bf16.msra.mxu0 %v1212_v21  ;;  %1092 = vmatprep.mubr.f32.mxu0 %v418_v37  ;;  %v1284_v9 = vpack.c.bf16 %v642_v8, %v641_v7  ;;  %v643_v21 = vld [vmem:[#allocation8 + $0x60] sm:$0xff]  ;;  %v644_v22 = vld [vmem:[#allocation8 + $0x68] sm:$0xff]  ;;  %v646_v26 = vld [vmem:[#allocation8 + $0x78] sm:$0xff] }
  0xad   : > { %1217 = vmatprep.subr.bf16.mxu0 %v1216_v28  ;;  %1243 = vmatpush3.bf16.msra.mxu1 %v1240_v25  ;;  %v1288_v23 = vpack.c.bf16 %v644_v22, %v643_v21  ;;  %v645_v25 = vld [vmem:[#allocation8 + $0x70] sm:$0xff]  ;;  %v736_v24 = vld [vmem:[#allocation10 + $0x8] sm:$0xff]  ;;  %v742_v37 = vld [vmem:[#allocation10 + $0x38] sm:$0xff] }
  0xae   : > { %1245 = vmatprep.subr.bf16.mxu1 %v1244_v31  ;;  %v1292_v27 = vpack.c.bf16 %v646_v26, %v645_v25  ;;  %v737_v29 = vld [vmem:[#allocation10 + $0x10] sm:$0xff]  ;;  %v740_v34 = vld [vmem:[#allocation10 + $0x28] sm:$0xff]  ;;  %v743_v39 = vld [vmem:[#allocation10 + $0x40] sm:$0xff] }
  0xaf   : > { %v1422_v48 = vpop.eup %1421  ;;  %v745_v42 = vld [vmem:[#allocation10 + $0x50] sm:$0xff]  ;;  %v978_v45 = vld [vmem:[%s2025_s4] ss:$0 sm:$0xff]  ;;  %v750_v58 = vld [vmem:[#allocation10 + $0x78] sm:$0xff] }
  0xb0   : > { %1219 = vmatpush3.bf16.msra.mxu0 %v1216_v28  ;;  %v419_v49 = vsel %vm415_vm0, %v1422_v48, %v412_v33  ;;  %v735_v28 = vld [vmem:[#allocation10] sm:$0xff]  ;;  %v749_v57 = vld [vmem:[#allocation10 + $0x70] sm:$0xff] }
  0xb1   : > { %1221 = vmatprep.subr.bf16.mxu0 %v1220_v36  ;;  %1247 = vmatpush3.bf16.msra.mxu1 %v1244_v31  ;;  %v1296_v30 = vpack.c.bf16 %v736_v24, %v735_v28  ;;  %v738_v31 = vld [vmem:[#allocation10 + $0x18] sm:$0xff]  ;;  %v739_v33 = vld [vmem:[#allocation10 + $0x20] sm:$0xff] }
  0xb2   : > { %1249 = vmatprep.subr.bf16.mxu1 %v1248_v40  ;;  %v1300_v32 = vpack.c.bf16 %v738_v31, %v737_v29  ;;  %v1304_v35 = vpack.c.bf16 %v740_v34, %v739_v33  ;;  %v747_v54 = vld [vmem:[#allocation10 + $0x60] sm:$0xff] }
  0xb3   : > { %v979_v60 = vld [vmem:[%s2027_s6] ss:$0 sm:$0xff] }
  0xb4   : > { %1223 = vmatpush3.bf16.msra.mxu0 %v1220_v36  ;;  %v741_v36 = vld [vmem:[#allocation10 + $0x30] sm:$0xff]  ;;  %v980_v5 = vld [vmem:[%s2029_s8] ss:$0 sm:$0xff] }
  0xb5   : > { %1225 = vmatprep.subr.bf16.mxu0 %v1224_v43  ;;  %1251 = vmatpush3.bf16.msra.mxu1 %v1248_v40  ;;  %v1308_v38 = vpack.c.bf16 %v742_v37, %v741_v36  ;;  %v744_v40 = vld [vmem:[#allocation10 + $0x48] sm:$0xff] }
  0xb6   : > { %1253 = vmatprep.subr.bf16.mxu1 %v1252_v46  ;;  %v1312_v41 = vpack.c.bf16 %v744_v40, %v743_v39 }
  0xb8   : > { %1227 = vmatpush3.bf16.msra.mxu0 %v1224_v43  ;;  %v746_v43 = vld [vmem:[#allocation10 + $0x58] sm:$0xff] }
  0xb9   : > { %1229 = vmatprep.subr.bf16.mxu0 %v1228_v47  ;;  %1255 = vmatpush3.bf16.msra.mxu1 %v1252_v46  ;;  %v1316_v44 = vpack.c.bf16 %v746_v43, %v745_v42 }
  0xba   : > { %1257 = vmatprep.subr.bf16.mxu1 %v1256_v52 }
  0xbc   : > { %1231 = vmatpush3.bf16.msra.mxu0 %v1228_v47 }
  0xbd   : > { %1259 = vmatpush3.bf16.msra.mxu1 %v1256_v52  ;;  %1265 = vmatprep.subr.bf16.mxu0 %v1264_v59 }
  0xbe   : > { %1261 = vmatprep.subr.bf16.mxu1 %v1260_v55 }
  0xbf   : > { %1093 = vmatmul.mubr.f32.vlgmr.msra.gmra.mrb[0].mxu0 %v419_v49 }
  0xc0   : > { %1267 = vmatpush3.bf16.msra.mxu0 %v1264_v59  ;;  %v1324_v59 = vpack.c.bf16 %v750_v58, %v749_v57 }
  0xc1   : > { %1263 = vmatpush3.bf16.msra.mxu1 %v1260_v55  ;;  %1269 = vmatprep.subr.bf16.mxu0 %v1268_v61  ;;  %v748_v55 = vld [vmem:[#allocation10 + $0x68] sm:$0xff] }
  0xc2   : > { %1297 = vmatprep.subr.bf16.mxu1 %v1296_v30  ;;  %v1320_v56 = vpack.c.bf16 %v748_v55, %v747_v54 }
  0xc4   : > { %1271 = vmatpush3.bf16.msra.mxu0 %v1268_v61 }
  0xc5   : > { %1273 = vmatprep.subr.bf16.mxu0 %v1272_v0 }
  0xc8   : > { %1275 = vmatpush3.bf16.msra.mxu0 %v1272_v0 }
  0xc9   : > { %1277 = vmatprep.subr.bf16.mxu0 %v1276_v3 }
  0xcc   : > { %1279 = vmatpush3.bf16.msra.mxu0 %v1276_v3 }
  0xcd   : > { %1281 = vmatprep.subr.bf16.mxu0 %v1280_v6 }
  0xd0   : > { %1283 = vmatpush3.bf16.msra.mxu0 %v1280_v6 }
  0xd1   : > { %1285 = vmatprep.subr.bf16.mxu0 %v1284_v9 }
  0xd4   : > { %1287 = vmatpush3.bf16.msra.mxu0 %v1284_v9 }
  0xd5   : > { %1289 = vmatprep.subr.bf16.mxu0 %v1288_v23 }
  0xd8   : > { %1291 = vmatpush3.bf16.msra.mxu0 %v1288_v23 }
  0xd9   : > { %1293 = vmatprep.subr.bf16.mxu0 %v1292_v27 }
  0xdc   : > { %1295 = vmatpush3.bf16.msra.mxu0 %v1292_v27 }
 0x192   : > { %v1094_v11 = vpop.f32.mrb[0].mxu0 }
 0x193   : > { %v515_v12 = vadd.f32 %v1094_v11, %v977_v10  ;;  %v509_v13 = vpop.f32.mrb[1].mxu0 }
 0x194   : > { %v510_v14 = vadd.f32 %v977_v10, %v509_v13 }
 0x195   : > { %vm520_vm1 = vcmp.gt.f32.partialorder %v515_v12, 0.0  ;;  %v522_v15 = vmul.f32 0.01, %v515_v12 }
 0x196   : > { %vm519_vm3 = vcmp.gt.f32.partialorder %v510_v14, 0.0  ;;  %v521_v16 = vmul.f32 0.01, %v510_v14 }
 0x197   : > { %v524_v17 = vsel %vm520_vm1, %v515_v12, %v522_v15 }
 0x198   : > { %v523_v18 = vsel %vm519_vm3, %v510_v14, %v521_v16  ;;  %v526_v20 = vsel %vm518_vm2, %v524_v17, %v515_v12 }
 0x199   : > { %v525_v19 = vsel %vm518_vm2, %v523_v18, %v510_v14 }
 0x19a   : > { %1127 = vmatprep.mubr.f32.mxu1 %v525_v19 }
 0x19b   : > { %1128 = vmatmul.mubr.f32.vlgmr.msra.gmra.mrb[0].mxu1 %v526_v20 }
 0x19c   : > { %1299 = vmatpush3.bf16.msra.mxu1 %v1296_v30 }
 0x19d   : > { %1301 = vmatprep.subr.bf16.mxu1 %v1300_v32 }
 0x1a0   : > { %1303 = vmatpush3.bf16.msra.mxu1 %v1300_v32 }
 0x1a1   : > { %1305 = vmatprep.subr.bf16.mxu1 %v1304_v35 }
 0x1a4   : > { %1307 = vmatpush3.bf16.msra.mxu1 %v1304_v35 }
 0x1a5   : > { %1309 = vmatprep.subr.bf16.mxu1 %v1308_v38 }
 0x1a8   : > { %1311 = vmatpush3.bf16.msra.mxu1 %v1308_v38 }
 0x1a9   : > { %1313 = vmatprep.subr.bf16.mxu1 %v1312_v41 }
 0x1ac   : > { %1315 = vmatpush3.bf16.msra.mxu1 %v1312_v41 }
 0x1ad   : > { %1317 = vmatprep.subr.bf16.mxu1 %v1316_v44 }
 0x1b0   : > { %1319 = vmatpush3.bf16.msra.mxu1 %v1316_v44 }
 0x1b1   : > { %1321 = vmatprep.subr.bf16.mxu1 %v1320_v56 }
 0x1b4   : > { %1323 = vmatpush3.bf16.msra.mxu1 %v1320_v56 }
 0x1b5   : > { %1325 = vmatprep.subr.bf16.mxu1 %v1324_v59 }
 0x1b8   : > { %1327 = vmatpush3.bf16.msra.mxu1 %v1324_v59 }
 0x26e   : > { %v1129_v46 = vpop.f32.mrb[0].mxu1 }
 0x26f   : > { %v622_v47 = vadd.f32 %v1129_v46, %v978_v45  ;;  %v616_v48 = vpop.f32.mrb[1].mxu1 }
 0x270   : > { %v617_v49 = vadd.f32 %v978_v45, %v616_v48 }
 0x271   : > { %v628_v50 = vmul.f32 0.01, %v622_v47  ;;  %vm626_vm4 = vcmp.gt.f32.partialorder %v622_v47, 0.0 }
 0x272   : > { %v627_v51 = vmul.f32 0.01, %v617_v49  ;;  %vm625_vm5 = vcmp.gt.f32.partialorder %v617_v49, 0.0 }
 0x273   : > { %v630_v53 = vsel %vm626_vm4, %v622_v47, %v628_v50 }
 0x274   : > { %v629_v52 = vsel %vm625_vm5, %v617_v49, %v627_v51 }
 0x275   : > { %1162 = vmatprep.mubr.f32.mxu0 %v629_v52 }
 0x276   : > { %1163 = vmatmul.mubr.f32.vlgmr.msra.gmra.mrb[2].mxu0 %v630_v53 }
 0x349   : > { %v1164_v61 = vpop.f32.mrb[2].mxu0 }
 0x34a   : > { %v726_v62 = vadd.f32 %v1164_v61, %v979_v60  ;;  %v720_v63 = vpop.f32.mrb[3].mxu0 }
 0x34b   : > { %v721_v0 = vadd.f32 %v979_v60, %v720_v63 }
 0x34c   : > { %v732_v1 = vmul.f32 0.01, %v726_v62  ;;  %vm730_vm6 = vcmp.gt.f32.partialorder %v726_v62, 0.0 }
 0x34d   : > { %v731_v2 = vmul.f32 0.01, %v721_v0  ;;  %vm729_vm7 = vcmp.gt.f32.partialorder %v721_v0, 0.0 }
 0x34e   : > { %v734_v4 = vsel %vm730_vm6, %v726_v62, %v732_v1 }
 0x34f   : > { %v733_v3 = vsel %vm729_vm7, %v721_v0, %v731_v2 }
 0x350   : > { %1197 = vmatprep.mubr.f32.mxu1 %v733_v3 }
 0x351   : > { %1198 = vmatmul.mubr.f32.vlgmr.msra.gmra.mrb[2].mxu1 %v734_v4 }
 0x424   : > { %v1199_v6 = vpop.f32.mrb[2].mxu1 }
 0x425   : > { %v830_v7 = vadd.f32 %v1199_v6, %v980_v5  ;;  %v824_v8 = vpop.f32.mrb[3].mxu1 }
 0x426   : > { %v825_v9 = vadd.f32 %v980_v5, %v824_v8 }
 0x427   : > { %834 = vst [vmem:[%s408_s20 + $0x8] sm:$0xff] %v830_v7 }
 0x428   : > { %833 = vst [vmem:[%s408_s20] sm:$0xff] %v825_v9 }
 0x429   : > { %1578 = shalt.err (!%p1575_p13)
}
 0x42a   : > { %s1579_s22 = scalar_lea.hbm %s1977_s17, 256  ;;  %s1583_s16 = scalar_lea.hbm %s2054_s15, 512 }
 0x42b   : > { %p1580_p9 = scmp.ne.s32.totalorder %s1977_s17, %s1579_s22  ;;  %p1584_p4 = scmp.lt.u32.totalorder %s1977_s17, %s2054_s15 }
 0x42c   : > { %p1585_p8 = scmp.lt.u32.totalorder %s1583_s16, %s1579_s22  ;;  %p1587_p3 = scmp.lt.u32.totalorder %s1579_s22, %s1977_s17 }
 0x42d   : > { %p1581_p0 = pnand %p1580_p9, %p1872_p10 }
 0x42e   : > { %p1586_p6 = por %p1585_p8, %p1584_p4 }
 0x42f   : > { %p1582_p11 = pneg %p1581_p0 }
 0x430   : > { %p1588_p5 = por %p1587_p3, %p1586_p6 }
 0x432   : > { %p1589_p7 = pnand %p1588_p5, %p1582_p11 }
 0x434   : > { %1592 = shalt.err (!%p1589_p7)
}
 0x435   : > { %s1649_s9 = smov 128   ;;  %s1650_s25 = smov 8  }
 0x436   : > { %1346 = dma.vmem_to_hbm [thread:$0]  (%p1872_p10), %s1972_s29, 256, %s1977_s17, %s836_s21, %s1649_s9, %s1649_s9, %s1650_s25  }
 0x437 PF: > { %s2055_s13 = sld [smem:[#allocation16_spill]]  ;;  %s2056_s26 = sld [smem:[#allocation17_spill]] }
 0x438   : > { %p2058_p1 = scmp.ge.s32.totalorder %s1639_s12, 2 }
 0x43d   : > { %s864_s19 = sand.u32 1, %s2055_s13   ;;  %p2057_p12 = scmp.ne.s32.totalorder %s2056_s26, 0 }
 0x43e   : > { %s865_s22 = scalar_lea.sflag [#allocation4], %s864_s19 }
 0x43f   : > { %p1366_p2 = pnand %p2058_p1, %p2057_p12 }
 0x441   : > { %1622 = dma.done.wait (!%p1366_p2), %s865_s22, 256  }
 0x442   : > { %1624 = vsyncadd (!%p1366_p2), %s865_s22, 4294967040  ;;  %p24_p13 = scmp.ge.s32.totalorder %s1862_s14, 4   ;;  %s2059_s30 = smov %s1631_s10 }
 0x443   : > { %s2060_s10 = smov %s1635_s11  ;;  %s2061_s11 = smov %s1878_s28 }
 0x444   : > { %s2062_s12 = smov %s1862_s14  ;;  %26 = sbr.rel (!%p24_p13) target bundleno = 9 (0x9), region = 117 }
 0x44b   :  { %870 = vsyncpa [#allocation3], 1 }
 0x44c   :  { %872 = vsyncpa [#allocation3 + $0x1], 1 }
 0x44d   :  { %873 = vsyncpa [#allocation6], 1 }
 0x44e   :  { %874 = vsyncpa [#allocation9], 1 }
 0x44f   :  { %875 = vsyncpa [#allocation4], 1 }
 0x450   :  { %877 = vsyncpa [#allocation4 + $0x1], 1 }

</bundles_post_ra>
